<compile_context>
chip_gen: v5e
topology: v5e:2x2
jax: 0.10.0
libtpu: 0.0.40
codegen_flags: <defaults>
</compile_context>

<pallas_src>
import jax
import jax.numpy as jnp
from jax.experimental import pallas as pl
from jax.experimental.pallas import tpu as pltpu

_D = 0.01                       # threshold
_LANE = 128
_TARGET_BLOCK_BYTES = 4 << 20   # ~4 MiB per block
_VMEM_LIMIT_BYTES = 32 << 20    # explicit scoped-VMEM budget (safe on v5e/v6e/v7x)


def _srelu_kernel(z_ref, o_ref):
    z = z_ref[...]
    # Compute in f32 for low-precision inputs (precision in the 0 < z < d band).
    zc = z if z.dtype == jnp.float32 else z.astype(jnp.float32)
    d = jnp.float32(_D)
    inv_2d = jnp.float32(0.5 / _D)          # fold 1/(2d) at trace time: mul, not div
    quad = zc * zc * inv_2d
    out = jnp.where(zc >= d, zc, jnp.where(zc <= 0.0, jnp.zeros_like(zc), quad))
    o_ref[...] = out.astype(o_ref.dtype)


def _largest_aligned_divisor(n, align, cap, max_scan=4096):
    """Largest multiple of `align` that divides n and is <= cap, or None."""
    t = min(cap, n)
    t = (t // align) * align
    scanned = 0
    while t >= align and scanned < max_scan:
        if n % t == 0:
            return t
        t -= align
        scanned += 1
    return None


def srelu(z: jax.Array, *, target_block_bytes: int = _TARGET_BLOCK_BYTES,
          donate: bool = False) -> jax.Array:
    orig_shape = z.shape
    dtype = z.dtype
    n = z.size
    if n == 0:
        return z

    itemsize = jnp.dtype(dtype).itemsize
    # Sublane alignment by element width (f32: 8, bf16: 16, int8/fp8: 32).
    sublane = {4: 8, 2: 16, 1: 32}.get(itemsize, 8)

    last = orig_shape[-1] if z.ndim >= 1 else 1
    z2d = z.reshape(-1, last)       # collapse leading dims only: layout-preserving
    rows, cols = z2d.shape

    # ---- column tiling --------------------------------------------------
    if cols % _LANE == 0:
        max_cols = max(_LANE,
                       (target_block_bytes // (sublane * itemsize)) // _LANE * _LANE)
        if cols > max_cols:
            # cols % 128 == 0 guarantees a 128-multiple divisor exists (>= 128).
            tile_cols = _largest_aligned_divisor(cols, _LANE, max_cols) or _LANE
        else:
            tile_cols = cols
    else:
        # Non-128-multiple trailing dim: block must span the full dim (legal),
        # which avoids any relayout of the input/output.
        tile_cols = cols
    grid_c = pl.cdiv(cols, tile_cols)

    # ---- row tiling -----------------------------------------------------
    budget_rows = max(sublane,
                      (target_block_bytes // (tile_cols * itemsize)) // sublane * sublane)
    if rows <= budget_rows:
        tile_rows = rows                         # full dim -> always legal
        # Megacore: if all work landed in a single block, split rows so v7x's two
        # TensorCores both stream (neutral on single-TC v5e/v6e).
        if grid_c == 1 and rows >= 2 * sublane:
            split = _largest_aligned_divisor(rows, sublane, rows // 2)
            if split is not None:
                tile_rows = split
    else:
        # Prefer an exact divisor so the edge block isn't a masked partial store;
        # fall back to a ragged tail handled by a clipped edge block.
        tile_rows = _largest_aligned_divisor(rows, sublane, budget_rows) or budget_rows
    grid_r = pl.cdiv(rows, tile_rows)

    cost = pl.CostEstimate(flops=6 * n, transcendentals=0,
                           bytes_accessed=2 * n * itemsize)

    out2d = pl.pallas_call(
        _srelu_kernel,
        out_shape=jax.ShapeDtypeStruct((rows, cols), dtype),
        grid=(grid_r, grid_c),
        in_specs=[pl.BlockSpec((tile_rows, tile_cols), lambda i, j: (i, j))],
        out_specs=pl.BlockSpec((tile_rows, tile_cols), lambda i, j: (i, j)),
        compiler_params=pltpu.CompilerParams(
            dimension_semantics=("parallel", "parallel"),
            vmem_limit_bytes=_VMEM_LIMIT_BYTES,
        ),
        cost_estimate=cost,
        input_output_aliases=({0: 0} if donate else {}),
    )(z2d)

    return out2d.reshape(orig_shape)


def _srelu_ref(z):
    # Pure-JAX reference mirroring the PyTorch module.
    d = jnp.asarray(_D, dtype=jnp.float32)
    zf = z.astype(jnp.float32)
    out = jnp.where(zf >= d, zf, jnp.where(zf <= 0.0, 0.0, zf * zf / (2.0 * d)))
    return out.astype(z.dtype)


if __name__ == "__main__":
    key = jax.random.PRNGKey(0)

    # Small NCHW-style activation; trailing dim 16 exercises the no-relayout path.
    x = jax.random.normal(key, (2, 4, 16, 16), dtype=jnp.float32) * 0.05
    y = jax.block_until_ready(srelu(x))
    y_ref = _srelu_ref(x)
    assert y.shape == x.shape and y.dtype == x.dtype
    assert jnp.allclose(y, y_ref, atol=1e-6, rtol=1e-6)

    # Ragged shape (rows and trailing dim both awkward): single full-array block.
    x2 = jax.random.normal(key, (3, 5, 7, 11), dtype=jnp.float32) * 0.05
    assert jnp.allclose(srelu(x2), _srelu_ref(x2), atol=1e-6, rtol=1e-6)

    # bf16 + lane-aligned trailing dim: exercises the multi-block / megacore split.
    x3 = (jax.random.normal(key, (2, 4, 32, 128)) * 0.05).astype(jnp.bfloat16)
    y3 = jax.block_until_ready(srelu(x3))
    assert y3.dtype == jnp.bfloat16
    assert jnp.allclose(y3.astype(jnp.float32), _srelu_ref(x3).astype(jnp.float32),
                        atol=1e-2, rtol=1e-2)

    print("KERNEL_OK")
</pallas_src>

<mosaic_0001>
module attributes {stable_mosaic.version = 11 : i64} {
  func.func @_srelu_kernel(%arg0: i32, %arg1: i32, %arg2: memref<64x16xf32, #tpu.memory_space<vmem>>, %arg3: memref<64x16xf32, #tpu.memory_space<vmem>>) attributes {dimension_semantics = [#tpu.dimension_semantics<parallel>, #tpu.dimension_semantics<parallel>], iteration_bounds = array<i64: 2, 1>, scalar_prefetch = 0 : i64, scratch_operands = 0 : i64, tpu.core_type = #tpu.core_type<tc>, window_params = [{transform_indices = @transform_0, window_bounds = array<i64: 64, 16>}, {transform_indices = @transform_1, window_bounds = array<i64: 64, 16>}]} {
    %c0 = arith.constant 0 : index
    %c0_0 = arith.constant 0 : index
    %0 = vector.load %arg2[%c0, %c0_0] : memref<64x16xf32, #tpu.memory_space<vmem>>, vector<64x16xf32>
    %1 = arith.mulf %0, %0 : vector<64x16xf32>
    %cst = arith.constant 5.000000e+01 : f32
    %2 = vector.broadcast %cst : f32 to vector<64x16xf32>
    %3 = arith.mulf %1, %2 : vector<64x16xf32>
    %cst_1 = arith.constant 0.00999999977 : f32
    %4 = vector.broadcast %cst_1 : f32 to vector<64x16xf32>
    %5 = arith.cmpf oge, %0, %4 : vector<64x16xf32>
    %cst_2 = arith.constant 0.000000e+00 : f32
    %6 = vector.broadcast %cst_2 : f32 to vector<64x16xf32>
    %7 = arith.cmpf ole, %0, %6 : vector<64x16xf32>
    %cst_3 = arith.constant 0.000000e+00 : f32
    %8 = vector.broadcast %cst_3 : f32 to vector<64x16xf32>
    %9 = arith.select %7, %8, %3 : vector<64x16xi1>, vector<64x16xf32>
    %10 = arith.select %5, %0, %9 : vector<64x16xi1>, vector<64x16xf32>
    %c0_4 = arith.constant 0 : index
    %c0_5 = arith.constant 0 : index
    %11 = vector.load %arg3[%c0_4, %c0_5] : memref<64x16xf32, #tpu.memory_space<vmem>>, vector<64x16xf32>
    tpu.vector_store %arg3[%c0_4, %c0_5], %10 {strides = array<i32>} : memref<64x16xf32, #tpu.memory_space<vmem>>, vector<64x16xf32>,
    return
  }
  func.func @transform_0(%arg0: i32, %arg1: i32) -> (i32, i32) {
    %c0_i32 = arith.constant 0 : i32
    return %arg0, %arg1 : i32, i32
  }
  func.func @transform_1(%arg0: i32, %arg1: i32) -> (i32, i32) {
    %c0_i32 = arith.constant 0 : i32
    return %arg0, %arg1 : i32, i32
  }
}

</mosaic_0001>

<bundles_post_ra>
// kernel: tpu_custom_call.1
= control target key start
LH: loop header
LB: loop body
LE: loop exit
PB: predicated region body
PF: predicated region fallthrough
CT: control target
= control target key end

     0   :  { %s363_s6 = smov 0   ;;  %s365_s7 = smov 0   ;;  %s430_s0 = inlined_call_operand.vmem [shape: f32[128,16], index: 0, kind: input, shape index: {}]   ;;  %s431_s1 = inlined_call_operand.vmem [shape: f32[128,16], index: 1, kind: output, shape index: {}]  }
   0x1   :  { %s367_s8 = smov 0  }
   0x2 LB: > { %s23_s9 = sadd.s32 1, %s347_s7  ;;  %p298_p0 = scmp.ge.s32.totalorder %s351_s8, 1  ;;  %s351_s8 = sphi %s367_s8, %s11_s8   ;;  %s347_s7 = sphi %s365_s7, %s433_s7   ;;  %s343_s6 = sphi %s363_s6, %s432_s6  }
   0x3   : > { %p25_p1 = scmp.ge.s32.totalorder %s23_s9, 2  ;;  %p107_p2 = scmp.lt.s32.totalorder %s351_s8, 3 }
   0x5   : > { %s435_s9 = smov (%p25_p1, %s23_s9), 0  ;;  %p108_p3 = pnand %p298_p0, %p107_p2 }
   0x6   : > { %s299_s10 = sshll.u32 (!%p108_p3), %s343_s6, 3 }
   0x7   : > { %111 = sbr.rel (%p108_p3) target bundleno = 32 (0x20), region = 24  ;;  %p134_p4 = scmp.lt.s32.totalorder (!%p108_p3), %s299_s10, 15 }
   0xc   : > { %s437_s10 = smov (!%p134_p4, %s299_s10), 15  ;;  %vm207_vm0 = vcmask 130048  }
   0xd   : > { %s300_s11 = sshll.u32 %s437_s10, 3 }
   0xe   : > { %s384_s14 = scalar_lea.vmem %s430_s0, %s300_s11  ;;  %s394_s17 = scalar_lea.vmem %s431_s1, %s300_s11 }
   0xf   : > { %v151_v0 = vld [vmem:[%s384_s14] sm:$0xff]  ;;  %v152_v1 = vld [vmem:[%s384_s14 + $0x8] sm:$0xff]  ;;  %v153_v2 = vld [vmem:[%s384_s14 + $0x10] sm:$0xff] }
  0x10   : > { %v159_v3 = vmul.f32 %v151_v0, %v151_v0  ;;  %vm175_vm1 = vcmp.ge.f32.partialorder %v151_v0, 0.01  ;;  %vm183_vm2 = vcmp.le.f32.partialorder %v151_v0, 0.0  ;;  %v160_v4 = vmul.f32 %v152_v1, %v152_v1  ;;  %v154_v5 = vld [vmem:[%s384_s14 + $0x18] sm:$0xff]  ;;  %v155_v6 = vld [vmem:[%s384_s14 + $0x20] sm:$0xff]  ;;  %v156_v13 = vld [vmem:[%s384_s14 + $0x28] sm:$0xff] }
  0x11   : > { %vm176_vm3 = vcmp.ge.f32.partialorder %v152_v1, 0.01  ;;  %vm184_vm4 = vcmp.le.f32.partialorder %v152_v1, 0.0  ;;  %v161_v7 = vmul.f32 %v153_v2, %v153_v2  ;;  %vm177_vm5 = vcmp.ge.f32.partialorder %v153_v2, 0.01  ;;  %v157_v21 = vld [vmem:[%s384_s14 + $0x30] sm:$0xff] }
  0x12   : > { %v167_v8 = vmul.f32 50.0, %v159_v3  ;;  %v168_v9 = vmul.f32 50.0, %v160_v4  ;;  %vm185_vm6 = vcmp.le.f32.partialorder %v153_v2, 0.0  ;;  %v162_v10 = vmul.f32 %v154_v5, %v154_v5  ;;  %v158_v25 = vld [vmem:[%s384_s14 + $0x38] sm:$0xff] }
  0x13   : > { %v169_v11 = vmul.f32 50.0, %v161_v7  ;;  %vm178_vm7 = vcmp.ge.f32.partialorder %v154_v5, 0.01  ;;  %vm186_vm8 = vcmp.le.f32.partialorder %v154_v5, 0.0  ;;  %v163_v12 = vmul.f32 %v155_v6, %v155_v6 }
  0x14   : > { %v191_v14 = vsel %vm183_vm2, 0.0, %v167_v8  ;;  %v192_v15 = vsel %vm184_vm4, 0.0, %v168_v9  ;;  %v170_v16 = vmul.f32 50.0, %v162_v10  ;;  %vm179_vm9 = vcmp.ge.f32.partialorder %v155_v6, 0.01 }
  0x15   : > { %v199_v17 = vsel %vm175_vm1, %v151_v0, %v191_v14  ;;  %v200_v18 = vsel %vm176_vm3, %v152_v1, %v192_v15  ;;  %v193_v19 = vsel %vm185_vm6, 0.0, %v169_v11  ;;  %v171_v20 = vmul.f32 50.0, %v163_v12 }
  0x16   : > { %208 = vst.msk [vmem:[%s394_s17] sm:$0xff] %vm207_vm0, %v199_v17  ;;  %v201_v22 = vsel %vm177_vm5, %v153_v2, %v193_v19  ;;  %v194_v23 = vsel %vm186_vm8, 0.0, %v170_v16  ;;  %vm187_vm10 = vcmp.le.f32.partialorder %v155_v6, 0.0  ;;  %v164_v24 = vmul.f32 %v156_v13, %v156_v13 }
  0x17   : > { %209 = vst.msk [vmem:[%s394_s17 + $0x8] sm:$0xff] %vm207_vm0, %v200_v18  ;;  %v202_v26 = vsel %vm178_vm7, %v154_v5, %v194_v23  ;;  %v195_v27 = vsel %vm187_vm10, 0.0, %v171_v20  ;;  %vm188_vm11 = vcmp.le.f32.partialorder %v156_v13, 0.0  ;;  %vm180_vm12 = vcmp.ge.f32.partialorder %v156_v13, 0.01 }
  0x18   : > { %210 = vst.msk [vmem:[%s394_s17 + $0x10] sm:$0xff] %vm207_vm0, %v201_v22  ;;  %v203_v28 = vsel %vm179_vm9, %v155_v6, %v195_v27  ;;  %v172_v29 = vmul.f32 50.0, %v164_v24  ;;  %v165_v30 = vmul.f32 %v157_v21, %v157_v21  ;;  %vm189_vm13 = vcmp.le.f32.partialorder %v157_v21, 0.0 }
  0x19   : > { %211 = vst.msk [vmem:[%s394_s17 + $0x18] sm:$0xff] %vm207_vm0, %v202_v26  ;;  %v166_v31 = vmul.f32 %v158_v25, %v158_v25  ;;  %vm181_vm14 = vcmp.ge.f32.partialorder %v157_v21, 0.01  ;;  %vm190_vm15 = vcmp.le.f32.partialorder %v158_v25, 0.0  ;;  %vm182_vm1 = vcmp.ge.f32.partialorder %v158_v25, 0.01 }
  0x1a   : > { %212 = vst.msk [vmem:[%s394_s17 + $0x20] sm:$0xff] %vm207_vm0, %v203_v28  ;;  %v196_v32 = vsel %vm188_vm11, 0.0, %v172_v29  ;;  %v173_v33 = vmul.f32 50.0, %v165_v30 }
  0x1b   : > { %v204_v34 = vsel %vm180_vm12, %v156_v13, %v196_v32  ;;  %v174_v35 = vmul.f32 50.0, %v166_v31 }
  0x1c   : > { %213 = vst.msk [vmem:[%s394_s17 + $0x28] sm:$0xff] %vm207_vm0, %v204_v34  ;;  %v197_v36 = vsel %vm189_vm13, 0.0, %v173_v33 }
  0x1d   : > { %v205_v37 = vsel %vm181_vm14, %v157_v21, %v197_v36  ;;  %v198_v38 = vsel %vm190_vm15, 0.0, %v174_v35 }
  0x1e   : > { %214 = vst.msk [vmem:[%s394_s17 + $0x30] sm:$0xff] %vm207_vm0, %v205_v37  ;;  %v206_v39 = vsel %vm182_vm1, %v158_v25, %v198_v38 }
  0x1f   : > { %215 = vst.msk [vmem:[%s394_s17 + $0x38] sm:$0xff] %vm207_vm0, %v206_v39 }
  0x20 PF: > { %s11_s8 = sadd.s32 1, %s351_s8   ;;  %s432_s6 = smov %s347_s7 }
  0x21   : > { %p8_p5 = scmp.ge.s32.totalorder %s11_s8, 4   ;;  %s433_s7 = smov %s435_s9 }
  0x23   :  { %10 = sbr.rel (!%p8_p5) target bundleno = 2 (0x2), region = 54 }

</bundles_post_ra>
